<compile_context>
chip_gen: v7x
topology: tpu7x:2x2x1
jax: 0.10.0
libtpu: 0.0.40
codegen_flags: <defaults>
</compile_context>

<pallas_src>
import math

import jax
import jax.numpy as jnp
from jax.experimental import pallas as pl
from jax.experimental.pallas import tpu as pltpu


def _round_up(n: int, m: int) -> int:
    return ((n + m - 1) // m) * m


def _cdiv(a: int, b: int) -> int:
    return -(-a // b)


def _device_vmem_bytes() -> int:
    """Per-core VMEM capacity; conservative 64 MiB (v7x) if the query fails."""
    try:
        info = pltpu.get_tpu_info()
        cap = getattr(info, "vmem_capacity_bytes", None)
        if cap:
            return int(cap)
    except Exception:
        pass
    return 64 << 20


def _qnet_kernel(x_ref, w1_ref, b1_ref, w2_ref, b2_ref, w3_ref, b3_ref, out_ref):
    # x arrives as f32 and is cast to the MXU input dtype here (saves a separate
    # XLA pad/cast pass over x in HBM before the kernel starts).
    x = x_ref[...].astype(w1_ref.dtype)
    # fc1 + ReLU  (bf16 MXU inputs, f32 accumulation / elementwise)
    h1 = jnp.dot(x, w1_ref[...], preferred_element_type=jnp.float32)
    h1 = jnp.maximum(h1 + b1_ref[...], 0.0)
    # fc2 + ReLU
    h2 = jnp.dot(h1.astype(w2_ref.dtype), w2_ref[...],
                 preferred_element_type=jnp.float32)
    h2 = jnp.maximum(h2 + b2_ref[...], 0.0)
    # fc3 (no activation); lane-dense (padded-to-128) bf16 output columns
    q = jnp.dot(h2.astype(w3_ref.dtype), w3_ref[...],
                preferred_element_type=jnp.float32)
    out_ref[...] = (q + b3_ref[...]).astype(out_ref.dtype)


def qnetwork_forward(x, params, *, tile_b: int = 2048,
                     compute_dtype=jnp.bfloat16):
    """x: (batch, state_dim) float32. params: dict of f32 weights/biases.

    Weights are stored (in_features, out_features) (transposed vs. PyTorch) so the
    kernel computes y = x @ W + b, matching nn.Linear semantics.
    NOTE: bf16 MXU inputs + bf16 output storage is an intentional precision
    tradeoff (~2-3 decimal digits); pass compute_dtype=jnp.float32 for full f32.
    """
    w1, b1, w2, b2, w3, b3 = (
        params["w1"], params["b1"],
        params["w2"], params["b2"],
        params["w3"], params["b3"],
    )
    batch, state_dim = x.shape
    hidden1 = w1.shape[1]          # 256
    hidden2 = w2.shape[1]          # 128
    action_dim = w3.shape[1]
    in_dtype = x.dtype

    # ---- lane-dense output: pad action_dim to a multiple of 128 lanes ----
    a_pad = _round_up(max(action_dim, 128), 128)
    if a_pad != action_dim:
        w3 = jnp.pad(w3, ((0, 0), (0, a_pad - action_dim)))
        b3 = jnp.pad(b3, ((0, 0), (0, a_pad - action_dim)))

    # ---- batch tiling: balanced tiles, 16-row aligned, >=2 even steps when big ----
    sub = 16 if jnp.dtype(compute_dtype).itemsize == 2 else 8
    n_steps = max(1, _cdiv(batch, tile_b))
    if n_steps < 2 and batch >= 512:
        n_steps = 2                     # keep both v7x TensorCores busy
    if n_steps > 1 and (n_steps % 2):
        n_steps += 1                    # even step count for the 2-TC megacore split
    tb = _round_up(_cdiv(batch, n_steps), sub)
    b_pad = tb * n_steps
    if b_pad != batch:
        x = jnp.pad(x, ((0, b_pad - batch), (0, 0)))   # no-op when already aligned

    # ---- dtype handling: weights bf16 (tiny, cast once); biases f32; x stays f32 ----
    w1_c = w1.astype(compute_dtype)
    w2_c = w2.astype(compute_dtype)
    w3_c = w3.astype(compute_dtype)
    b1_f = b1.astype(jnp.float32)
    b2_f = b2.astype(jnp.float32)
    b3_f = b3.astype(jnp.float32)

    grid = (n_steps,)
    out_store_dtype = compute_dtype     # bf16 writeback; cast back outside

    # ---- VMEM budget ----
    xb = jnp.dtype(in_dtype).itemsize
    cb = jnp.dtype(compute_dtype).itemsize
    x_tile_bytes = tb * state_dim * xb
    out_tile_bytes = tb * a_pad * cb
    weight_bytes = (state_dim * hidden1 + hidden1 * hidden2 + hidden2 * a_pad) * cb
    bias_bytes = (hidden1 + hidden2 + a_pad) * 4
    scratch_bytes = tb * (hidden1 + hidden2 + a_pad) * 4 \
        + tb * (hidden1 + hidden2 + state_dim) * cb
    vmem_limit = 2 * (x_tile_bytes + out_tile_bytes) \
        + 2 * (weight_bytes + bias_bytes) + scratch_bytes
    vmem_limit = int(vmem_limit * 2) + (4 << 20)
    vmem_limit = min(vmem_limit, _device_vmem_bytes() - (8 << 20))

    flops = 2 * b_pad * (state_dim * hidden1 + hidden1 * hidden2 + hidden2 * a_pad)
    bytes_accessed = (b_pad * state_dim * xb + weight_bytes + bias_bytes
                      + b_pad * a_pad * cb)
    cost = pl.CostEstimate(flops=flops, transcendentals=0,
                           bytes_accessed=bytes_accessed)

    resident = lambda i: (0, 0)   # weights/biases stay put across grid steps

    def _call(single_buffer_weights: bool):
        res_kw = ({"pipeline_mode": pl.Buffered(1)}
                  if single_buffer_weights else {})
        in_specs = [
            pl.BlockSpec((tb, state_dim), lambda i: (i, 0)),               # x tile
            pl.BlockSpec((state_dim, hidden1), resident, **res_kw),        # w1
            pl.BlockSpec((1, hidden1), resident, **res_kw),                # b1
            pl.BlockSpec((hidden1, hidden2), resident, **res_kw),          # w2
            pl.BlockSpec((1, hidden2), resident, **res_kw),                # b2
            pl.BlockSpec((hidden2, a_pad), resident, **res_kw),            # w3
            pl.BlockSpec((1, a_pad), resident, **res_kw),                  # b3
        ]
        return pl.pallas_call(
            _qnet_kernel,
            out_shape=jax.ShapeDtypeStruct((b_pad, a_pad), out_store_dtype),
            grid=grid,
            in_specs=in_specs,
            out_specs=pl.BlockSpec((tb, a_pad), lambda i: (i, 0)),
            compiler_params=pltpu.CompilerParams(
                dimension_semantics=("parallel",),
                vmem_limit_bytes=vmem_limit,
            ),
            cost_estimate=cost,
        )(x, w1_c, b1_f, w2_c, b2_f, w3_c, b3_f)

    try:
        out_padded = _call(True)
    except Exception:
        # pl.Buffered(1) not accepted by this jax/Mosaic version -> default buffering
        out_padded = _call(False)

    # strip batch / lane padding, cast back to the caller's dtype
    return out_padded[:batch, :action_dim].astype(in_dtype)


def init_params(key, state_dim, action_dim):
    """Deterministic init mimicking PyTorch nn.Linear default (U(-1/sqrt(fan_in), +))."""
    def linear_init(k, fan_in, fan_out):
        kw, kb = jax.random.split(k)
        bound = 1.0 / math.sqrt(fan_in)
        w = jax.random.uniform(kw, (fan_in, fan_out), jnp.float32, -bound, bound)
        b = jax.random.uniform(kb, (1, fan_out), jnp.float32, -bound, bound)
        return w, b

    k1, k2, k3 = jax.random.split(key, 3)
    w1, b1 = linear_init(k1, state_dim, 256)
    w2, b2 = linear_init(k2, 256, 128)
    w3, b3 = linear_init(k3, 128, action_dim)
    return {"w1": w1, "b1": b1, "w2": w2, "b2": b2, "w3": w3, "b3": b3}


def qnetwork_reference(x, p):
    h1 = jnp.maximum(x @ p["w1"] + p["b1"], 0.0)
    h2 = jnp.maximum(h1 @ p["w2"] + p["b2"], 0.0)
    return h2 @ p["w3"] + p["b3"]


if __name__ == "__main__":
    # NOTE: at batch this small the call is pure launch overhead; in a real RL
    # loop batch many env states (the adaptive tiling above kicks in then).
    batch, state_dim, action_dim = 4, 16, 8

    key = jax.random.PRNGKey(0)
    kx, kp = jax.random.split(key)
    x = jax.random.normal(kx, (batch, state_dim), dtype=jnp.float32)
    params = init_params(kp, state_dim, action_dim)

    out = qnetwork_forward(x, params)
    out = jax.block_until_ready(out)

    ref = qnetwork_reference(x, params)
    assert out.shape == (batch, action_dim)
    assert out.dtype == x.dtype
    # bf16 MXU inputs + bf16 output storage, f32 accumulation -> relaxed tolerance
    assert jnp.allclose(out, ref, atol=5e-2, rtol=5e-2)

    print("KERNEL_OK")
</pallas_src>

<mosaic_0001>
module attributes {stable_mosaic.version = 11 : i64} {
  func.func @_qnet_kernel(%arg0: i32, %arg1: memref<16x16xf32, #tpu.memory_space<vmem>>, %arg2: memref<16x256xbf16, #tpu.memory_space<vmem>>, %arg3: memref<1x256xf32, #tpu.memory_space<vmem>>, %arg4: memref<256x128xbf16, #tpu.memory_space<vmem>>, %arg5: memref<1x128xf32, #tpu.memory_space<vmem>>, %arg6: memref<128x128xbf16, #tpu.memory_space<vmem>>, %arg7: memref<1x128xf32, #tpu.memory_space<vmem>>, %arg8: memref<16x128xbf16, #tpu.memory_space<vmem>>) attributes {dimension_semantics = [#tpu.dimension_semantics<parallel>], iteration_bounds = array<i64: 1>, scalar_prefetch = 0 : i64, scratch_operands = 0 : i64, tpu.core_type = #tpu.core_type<tc>, window_params = [{transform_indices = @transform_0, window_bounds = array<i64: 16, 16>}, {pipeline_mode = #tpu.pipeline_mode<synchronous>, transform_indices = @transform_1, window_bounds = array<i64: 16, 256>}, {pipeline_mode = #tpu.pipeline_mode<synchronous>, transform_indices = @transform_2, window_bounds = array<i64: 1, 256>}, {pipeline_mode = #tpu.pipeline_mode<synchronous>, transform_indices = @transform_3, window_bounds = array<i64: 256, 128>}, {pipeline_mode = #tpu.pipeline_mode<synchronous>, transform_indices = @transform_4, window_bounds = array<i64: 1, 128>}, {pipeline_mode = #tpu.pipeline_mode<synchronous>, transform_indices = @transform_5, window_bounds = array<i64: 128, 128>}, {pipeline_mode = #tpu.pipeline_mode<synchronous>, transform_indices = @transform_6, window_bounds = array<i64: 1, 128>}, {transform_indices = @transform_7, window_bounds = array<i64: 16, 128>}]} {
    %c0 = arith.constant 0 : index
    %c0_0 = arith.constant 0 : index
    %0 = vector.load %arg1[%c0, %c0_0] : memref<16x16xf32, #tpu.memory_space<vmem>>, vector<16x16xf32>
    %1 = arith.truncf %0 : vector<16x16xf32> to vector<16x16xbf16>
    %c0_1 = arith.constant 0 : index
    %c0_2 = arith.constant 0 : index
    %2 = vector.load %arg2[%c0_1, %c0_2] : memref<16x256xbf16, #tpu.memory_space<vmem>>, vector<16x256xbf16>
    %cst = arith.constant dense<0.000000e+00> : vector<16x256xf32>
    %3 = tpu.matmul %1, %2, %cst {dimension_numbers = #tpu.dot_dimension_numbers<[1], [0], [0], [1], [0, 0, 1, 1], [], []>} : vector<16x16xbf16>, vector<16x256xbf16>, vector<16x256xf32> -> vector<16x256xf32>
    %c0_3 = arith.constant 0 : index
    %c0_4 = arith.constant 0 : index
    %4 = vector.load %arg3[%c0_3, %c0_4] : memref<1x256xf32, #tpu.memory_space<vmem>>, vector<1x256xf32>
    %5 = vector.broadcast %4 : vector<1x256xf32> to vector<16x256xf32>
    %6 = arith.addf %3, %5 : vector<16x256xf32>
    %cst_5 = arith.constant 0.000000e+00 : f32
    %7 = vector.broadcast %cst_5 : f32 to vector<16x256xf32>
    %8 = arith.maximumf %6, %7 : vector<16x256xf32>
    %9 = arith.truncf %8 : vector<16x256xf32> to vector<16x256xbf16>
    %c0_6 = arith.constant 0 : index
    %c0_7 = arith.constant 0 : index
    %10 = vector.load %arg4[%c0_6, %c0_7] : memref<256x128xbf16, #tpu.memory_space<vmem>>, vector<256x128xbf16>
    %cst_8 = arith.constant dense<0.000000e+00> : vector<16x128xf32>
    %11 = tpu.matmul %9, %10, %cst_8 {dimension_numbers = #tpu.dot_dimension_numbers<[1], [0], [0], [1], [0, 0, 1, 1], [], []>} : vector<16x256xbf16>, vector<256x128xbf16>, vector<16x128xf32> -> vector<16x128xf32>
    %c0_9 = arith.constant 0 : index
    %c0_10 = arith.constant 0 : index
    %12 = vector.load %arg5[%c0_9, %c0_10] : memref<1x128xf32, #tpu.memory_space<vmem>>, vector<1x128xf32>
    %13 = vector.broadcast %12 : vector<1x128xf32> to vector<16x128xf32>
    %14 = arith.addf %11, %13 : vector<16x128xf32>
    %cst_11 = arith.constant 0.000000e+00 : f32
    %15 = vector.broadcast %cst_11 : f32 to vector<16x128xf32>
    %16 = arith.maximumf %14, %15 : vector<16x128xf32>
    %17 = arith.truncf %16 : vector<16x128xf32> to vector<16x128xbf16>
    %c0_12 = arith.constant 0 : index
    %c0_13 = arith.constant 0 : index
    %18 = vector.load %arg6[%c0_12, %c0_13] : memref<128x128xbf16, #tpu.memory_space<vmem>>, vector<128x128xbf16>
    %cst_14 = arith.constant dense<0.000000e+00> : vector<16x128xf32>
    %19 = tpu.matmul %17, %18, %cst_14 {dimension_numbers = #tpu.dot_dimension_numbers<[1], [0], [0], [1], [0, 0, 1, 1], [], []>} : vector<16x128xbf16>, vector<128x128xbf16>, vector<16x128xf32> -> vector<16x128xf32>
    %c0_15 = arith.constant 0 : index
    %c0_16 = arith.constant 0 : index
    %20 = vector.load %arg7[%c0_15, %c0_16] : memref<1x128xf32, #tpu.memory_space<vmem>>, vector<1x128xf32>
    %21 = vector.broadcast %20 : vector<1x128xf32> to vector<16x128xf32>
    %22 = arith.addf %19, %21 : vector<16x128xf32>
    %23 = arith.truncf %22 : vector<16x128xf32> to vector<16x128xbf16>
    %c0_17 = arith.constant 0 : index
    %c0_18 = arith.constant 0 : index
    %24 = vector.load %arg8[%c0_17, %c0_18] : memref<16x128xbf16, #tpu.memory_space<vmem>>, vector<16x128xbf16>
    tpu.vector_store %arg8[%c0_17, %c0_18], %23 {strides = array<i32>} : memref<16x128xbf16, #tpu.memory_space<vmem>>, vector<16x128xbf16>,
    return
  }
  func.func @transform_0(%arg0: i32) -> (i32, i32) {
    %c0_i32 = arith.constant 0 : i32
    %c0_i32_0 = arith.constant 0 : i32
    return %arg0, %c0_i32 : i32, i32
  }
  func.func @transform_1(%arg0: i32) -> (i32, i32) {
    %c0_i32 = arith.constant 0 : i32
    %c0_i32_0 = arith.constant 0 : i32
    %c0_i32_1 = arith.constant 0 : i32
    return %c0_i32, %c0_i32_0 : i32, i32
  }
  func.func @transform_2(%arg0: i32) -> (i32, i32) {
    %c0_i32 = arith.constant 0 : i32
    %c0_i32_0 = arith.constant 0 : i32
    %c0_i32_1 = arith.constant 0 : i32
    return %c0_i32, %c0_i32_0 : i32, i32
  }
  func.func @transform_3(%arg0: i32) -> (i32, i32) {
    %c0_i32 = arith.constant 0 : i32
    %c0_i32_0 = arith.constant 0 : i32
    %c0_i32_1 = arith.constant 0 : i32
    return %c0_i32, %c0_i32_0 : i32, i32
  }
  func.func @transform_4(%arg0: i32) -> (i32, i32) {
    %c0_i32 = arith.constant 0 : i32
    %c0_i32_0 = arith.constant 0 : i32
    %c0_i32_1 = arith.constant 0 : i32
    return %c0_i32, %c0_i32_0 : i32, i32
  }
  func.func @transform_5(%arg0: i32) -> (i32, i32) {
    %c0_i32 = arith.constant 0 : i32
    %c0_i32_0 = arith.constant 0 : i32
    %c0_i32_1 = arith.constant 0 : i32
    return %c0_i32, %c0_i32_0 : i32, i32
  }
  func.func @transform_6(%arg0: i32) -> (i32, i32) {
    %c0_i32 = arith.constant 0 : i32
    %c0_i32_0 = arith.constant 0 : i32
    %c0_i32_1 = arith.constant 0 : i32
    return %c0_i32, %c0_i32_0 : i32, i32
  }
  func.func @transform_7(%arg0: i32) -> (i32, i32) {
    %c0_i32 = arith.constant 0 : i32
    %c0_i32_0 = arith.constant 0 : i32
    return %arg0, %c0_i32 : i32, i32
  }
}

module attributes {stable_mosaic.version = 11 : i64} {
  func.func @_qnet_kernel(%arg0: i32, %arg1: memref<16x16xf32, #tpu.memory_space<vmem>>, %arg2: memref<16x256xbf16, #tpu.memory_space<vmem>>, %arg3: memref<1x256xf32, #tpu.memory_space<vmem>>, %arg4: memref<256x128xbf16, #tpu.memory_space<vmem>>, %arg5: memref<1x128xf32, #tpu.memory_space<vmem>>, %arg6: memref<128x128xbf16, #tpu.memory_space<vmem>>, %arg7: memref<1x128xf32, #tpu.memory_space<vmem>>, %arg8: memref<16x128xbf16, #tpu.memory_space<vmem>>) attributes {dimension_semantics = [#tpu.dimension_semantics<parallel>], iteration_bounds = array<i64: 1>, scalar_prefetch = 0 : i64, scratch_operands = 0 : i64, tpu.core_type = #tpu.core_type<tc>, window_params = [{transform_indices = @transform_0, window_bounds = array<i64: 16, 16>}, {pipeline_mode = #tpu.pipeline_mode<synchronous>, transform_indices = @transform_1, window_bounds = array<i64: 16, 256>}, {pipeline_mode = #tpu.pipeline_mode<synchronous>, transform_indices = @transform_2, window_bounds = array<i64: 1, 256>}, {pipeline_mode = #tpu.pipeline_mode<synchronous>, transform_indices = @transform_3, window_bounds = array<i64: 256, 128>}, {pipeline_mode = #tpu.pipeline_mode<synchronous>, transform_indices = @transform_4, window_bounds = array<i64: 1, 128>}, {pipeline_mode = #tpu.pipeline_mode<synchronous>, transform_indices = @transform_5, window_bounds = array<i64: 128, 128>}, {pipeline_mode = #tpu.pipeline_mode<synchronous>, transform_indices = @transform_6, window_bounds = array<i64: 1, 128>}, {transform_indices = @transform_7, window_bounds = array<i64: 16, 128>}]} {
    %c0 = arith.constant 0 : index
    %c0_0 = arith.constant 0 : index
    %0 = vector.load %arg1[%c0, %c0_0] : memref<16x16xf32, #tpu.memory_space<vmem>>, vector<16x16xf32>
    %1 = arith.truncf %0 : vector<16x16xf32> to vector<16x16xbf16>
    %c0_1 = arith.constant 0 : index
    %c0_2 = arith.constant 0 : index
    %2 = vector.load %arg2[%c0_1, %c0_2] : memref<16x256xbf16, #tpu.memory_space<vmem>>, vector<16x256xbf16>
    %cst = arith.constant dense<0.000000e+00> : vector<16x256xf32>
    %3 = tpu.matmul %1, %2, %cst {dimension_numbers = #tpu.dot_dimension_numbers<[1], [0], [0], [1], [0, 0, 1, 1], [], []>} : vector<16x16xbf16>, vector<16x256xbf16>, vector<16x256xf32> -> vector<16x256xf32>
    %c0_3 = arith.constant 0 : index
    %c0_4 = arith.constant 0 : index
    %4 = vector.load %arg3[%c0_3, %c0_4] : memref<1x256xf32, #tpu.memory_space<vmem>>, vector<1x256xf32>
    %5 = vector.broadcast %4 : vector<1x256xf32> to vector<16x256xf32>
    %6 = arith.addf %3, %5 : vector<16x256xf32>
    %cst_5 = arith.constant 0.000000e+00 : f32
    %7 = vector.broadcast %cst_5 : f32 to vector<16x256xf32>
    %8 = arith.maximumf %6, %7 : vector<16x256xf32>
    %9 = arith.truncf %8 : vector<16x256xf32> to vector<16x256xbf16>
    %c0_6 = arith.constant 0 : index
    %c0_7 = arith.constant 0 : index
    %10 = vector.load %arg4[%c0_6, %c0_7] : memref<256x128xbf16, #tpu.memory_space<vmem>>, vector<256x128xbf16>
    %cst_8 = arith.constant dense<0.000000e+00> : vector<16x128xf32>
    %11 = tpu.matmul %9, %10, %cst_8 {dimension_numbers = #tpu.dot_dimension_numbers<[1], [0], [0], [1], [0, 0, 1, 1], [], []>} : vector<16x256xbf16>, vector<256x128xbf16>, vector<16x128xf32> -> vector<16x128xf32>
    %c0_9 = arith.constant 0 : index
    %c0_10 = arith.constant 0 : index
    %12 = vector.load %arg5[%c0_9, %c0_10] : memref<1x128xf32, #tpu.memory_space<vmem>>, vector<1x128xf32>
    %13 = vector.broadcast %12 : vector<1x128xf32> to vector<16x128xf32>
    %14 = arith.addf %11, %13 : vector<16x128xf32>
    %cst_11 = arith.constant 0.000000e+00 : f32
    %15 = vector.broadcast %cst_11 : f32 to vector<16x128xf32>
    %16 = arith.maximumf %14, %15 : vector<16x128xf32>
    %17 = arith.truncf %16 : vector<16x128xf32> to vector<16x128xbf16>
    %c0_12 = arith.constant 0 : index
    %c0_13 = arith.constant 0 : index
    %18 = vector.load %arg6[%c0_12, %c0_13] : memref<128x128xbf16, #tpu.memory_space<vmem>>, vector<128x128xbf16>
    %cst_14 = arith.constant dense<0.000000e+00> : vector<16x128xf32>
    %19 = tpu.matmul %17, %18, %cst_14 {dimension_numbers = #tpu.dot_dimension_numbers<[1], [0], [0], [1], [0, 0, 1, 1], [], []>} : vector<16x128xbf16>, vector<128x128xbf16>, vector<16x128xf32> -> vector<16x128xf32>
    %c0_15 = arith.constant 0 : index
    %c0_16 = arith.constant 0 : index
    %20 = vector.load %arg7[%c0_15, %c0_16] : memref<1x128xf32, #tpu.memory_space<vmem>>, vector<1x128xf32>
    %21 = vector.broadcast %20 : vector<1x128xf32> to vector<16x128xf32>
    %22 = arith.addf %19, %21 : vector<16x128xf32>
    %23 = arith.truncf %22 : vector<16x128xf32> to vector<16x128xbf16>
    %c0_17 = arith.constant 0 : index
    %c0_18 = arith.constant 0 : index
    %24 = vector.load %arg8[%c0_17, %c0_18] : memref<16x128xbf16, #tpu.memory_space<vmem>>, vector<16x128xbf16>
    tpu.vector_store %arg8[%c0_17, %c0_18], %23 {strides = array<i32>} : memref<16x128xbf16, #tpu.memory_space<vmem>>, vector<16x128xbf16>,
    return
  }
  func.func @transform_0(%arg0: i32) -> (i32, i32) {
    %c0_i32 = arith.constant 0 : i32
    %c0_i32_0 = arith.constant 0 : i32
    return %arg0, %c0_i32 : i32, i32
  }
  func.func @transform_1(%arg0: i32) -> (i32, i32) {
    %c0_i32 = arith.constant 0 : i32
    %c0_i32_0 = arith.constant 0 : i32
    %c0_i32_1 = arith.constant 0 : i32
    return %c0_i32, %c0_i32_0 : i32, i32
  }
  func.func @transform_2(%arg0: i32) -> (i32, i32) {
    %c0_i32 = arith.constant 0 : i32
    %c0_i32_0 = arith.constant 0 : i32
    %c0_i32_1 = arith.constant 0 : i32
    return %c0_i32, %c0_i32_0 : i32, i32
  }
  func.func @transform_3(%arg0: i32) -> (i32, i32) {
    %c0_i32 = arith.constant 0 : i32
    %c0_i32_0 = arith.constant 0 : i32
    %c0_i32_1 = arith.constant 0 : i32
    return %c0_i32, %c0_i32_0 : i32, i32
  }
  func.func @transform_4(%arg0: i32) -> (i32, i32) {
    %c0_i32 = arith.constant 0 : i32
    %c0_i32_0 = arith.constant 0 : i32
    %c0_i32_1 = arith.constant 0 : i32
    return %c0_i32, %c0_i32_0 : i32, i32
  }
  func.func @transform_5(%arg0: i32) -> (i32, i32) {
    %c0_i32 = arith.constant 0 : i32
    %c0_i32_0 = arith.constant 0 : i32
    %c0_i32_1 = arith.constant 0 : i32
    return %c0_i32, %c0_i32_0 : i32, i32
  }
  func.func @transform_6(%arg0: i32) -> (i32, i32) {
    %c0_i32 = arith.constant 0 : i32
    %c0_i32_0 = arith.constant 0 : i32
    %c0_i32_1 = arith.constant 0 : i32
    return %c0_i32, %c0_i32_0 : i32, i32
  }
  func.func @transform_7(%arg0: i32) -> (i32, i32) {
    %c0_i32 = arith.constant 0 : i32
    %c0_i32_0 = arith.constant 0 : i32
    return %arg0, %c0_i32 : i32, i32
  }
}

</mosaic_0001>

<bundles_post_ra>
// kernel: tpu_custom_call.1
= control target key start
LH: loop header
LB: loop body
LE: loop exit
PB: predicated region body
PF: predicated region fallthrough
CT: control target
= control target key end

     0   :  { %12 = vsyncpa [#allocation3], 0  ;;  %s866_s0 = inlined_call_operand.hbm [shape: f32[16,16], index: 0, kind: input, shape index: {}]   ;;  %s867_s1 = inlined_call_operand.hbm [shape: bf16[16,256], index: 1, kind: input, shape index: {}]   ;;  %s868_s2 = inlined_call_operand.vmem [shape: f32[1,256], index: 2, kind: input, shape index: {}]   ;;  %s869_s3 = inlined_call_operand.hbm [shape: bf16[256,128], index: 3, kind: input, shape index: {}]   ;;  %s870_s4 = inlined_call_operand.vmem [shape: f32[1,128], index: 4, kind: input, shape index: {}]   ;;  %s871_s5 = inlined_call_operand.hbm [shape: bf16[128,128], index: 5, kind: input, shape index: {}]   ;;  %s872_s6 = inlined_call_operand.vmem [shape: f32[1,128], index: 6, kind: input, shape index: {}]   ;;  %s873_s7 = inlined_call_operand.hbm [shape: bf16[16,128], index: 7, kind: output, shape index: {}]  }
   0x1   :  { %13 = vsyncpa [#allocation6], 0 }
   0x2   :  { %14 = vsyncpa [#allocation9], 0 }
   0x3   :  { %15 = vsyncpa [#allocation4], 0  ;;  %s729_s24 = smov [#allocation5]   ;;  %s730_s26 = smov [#allocation2]  }
   0x4   :  { %s33_s25 = sshll.u32 %s729_s24, 4  ;;  %s21_s27 = sshll.u32 %s730_s26, 4  ;;  %s34_s25 = int_to_ptr.vmem [resolvable:$true] %s33_s25  ;;  %s781_s27 = int_to_ptr.vmem [resolvable:$true] %s21_s27 }
   0x5   :  { %s611_s30 = scalar_lea.hbm %s867_s1, 256 }
   0x6   :  { %p612_p0 = scmp.ne.s32.totalorder %s867_s1, %s611_s30  ;;  %p615_p1 = scmp.lt.u32.totalorder %s611_s30, %s867_s1 }
   0x8   :  { %p617_p2 = pnand %p615_p1, %p612_p0 }
   0xa   :  { %620 = shalt.err (!%p617_p2)
}
   0xb   :  { %s621_s12 = scalar_lea.vmem %s34_s25, 256  ;;  %p626_p4 = scmp.lt.s32.totalorder %s34_s25, %s34_s25 }
   0xc   :  { %p622_p3 = scmp.ne.s32.totalorder %s34_s25, %s621_s12  ;;  %p627_p5 = scmp.lt.s32.totalorder %s621_s12, %s621_s12 }
   0xe   :  { %p628_p6 = por %p627_p5, %p626_p4 }
  0x10   :  { %p629_p7 = pnand %p628_p6, %p622_p3 }
  0x12   :  { %632 = shalt.err (!%p629_p7)
}
  0x13   :  { %s731_s13 = smov 128   ;;  %s732_s14 = smov 8  }
  0x14   :  { %39 = dma.hbm_to_vmem [thread:$0]  %s867_s1, 256, %s34_s25, [#allocation6], %s731_s13, %s731_s13, %s732_s14  }
  0x15   :  { %s633_s19 = scalar_lea.hbm %s866_s0, 256 }
  0x16   :  { %p634_p8 = scmp.ne.s32.totalorder %s866_s0, %s633_s19  ;;  %p637_p9 = scmp.lt.u32.totalorder %s633_s19, %s866_s0 }
  0x18   :  { %p639_p10 = pnand %p637_p9, %p634_p8 }
  0x1a   :  { %642 = shalt.err (!%p639_p10)
}
  0x1b   :  { %s643_s24 = scalar_lea.vmem %s781_s27, 256  ;;  %p648_p12 = scmp.lt.s32.totalorder %s781_s27, %s781_s27 }
  0x1c   :  { %p644_p11 = scmp.ne.s32.totalorder %s781_s27, %s643_s24  ;;  %p649_p13 = scmp.lt.s32.totalorder %s643_s24, %s643_s24 }
  0x1e   :  { %p650_p0 = por %p649_p13, %p648_p12 }
  0x20   :  { %p651_p1 = pnand %p650_p0, %p644_p11 }
  0x22   :  { %654 = shalt.err (!%p651_p1)
}
  0x23   :  { %27 = dma.hbm_to_vmem [thread:$0]  %s866_s0, 256, %s781_s27, [#allocation3], %s731_s13, %s731_s13, %s732_s14  }
  0x24   :  { %s733_s26 = smov [#allocation7]   ;;  %s655_s8 = scalar_lea.hbm %s869_s3, 2048 }
  0x25   :  { %s47_s28 = sshll.u32 %s733_s26, 4  ;;  %p656_p2 = scmp.ne.s32.totalorder %s869_s3, %s655_s8  ;;  %s48_s28 = int_to_ptr.vmem [resolvable:$true] %s47_s28 }
  0x26   :  { %p659_p3 = scmp.lt.u32.totalorder %s655_s8, %s869_s3 }
  0x28   :  { %p661_p4 = pnand %p659_p3, %p656_p2 }
  0x2a   :  { %664 = shalt.err (!%p661_p4)
}
  0x2b   :  { %s665_s15 = scalar_lea.vmem %s48_s28, 2048  ;;  %p670_p6 = scmp.lt.s32.totalorder %s48_s28, %s48_s28 }
  0x2c   :  { %p666_p5 = scmp.ne.s32.totalorder %s48_s28, %s665_s15  ;;  %p671_p7 = scmp.lt.s32.totalorder %s665_s15, %s665_s15 }
  0x2e   :  { %p672_p8 = por %p671_p7, %p670_p6 }
  0x30   :  { %p673_p9 = pnand %p672_p8, %p666_p5 }
  0x32   :  { %676 = shalt.err (!%p673_p9)
}
  0x33   :  { %s734_s0 = smov 64   ;;  %s735_s27 = smov 4  }
  0x34   :  { %53 = dma.hbm_to_vmem [thread:$0]  %s869_s3, 2048, %s48_s28, [#allocation6], %s734_s0, %s734_s0, %s735_s27  }
  0x35   :  { %s736_s16 = smov [#allocation8]   ;;  %s677_s20 = scalar_lea.hbm %s871_s5, 1024 }
  0x36   :  { %s61_s17 = sshll.u32 %s736_s16, 4  ;;  %p678_p10 = scmp.ne.s32.totalorder %s871_s5, %s677_s20  ;;  %s62_s17 = int_to_ptr.vmem [resolvable:$true] %s61_s17 }
  0x37   :  { %p681_p11 = scmp.lt.u32.totalorder %s677_s20, %s871_s5 }
  0x39   :  { %p683_p12 = pnand %p681_p11, %p678_p10 }
  0x3b   :  { %686 = shalt.err (!%p683_p12)
}
  0x3c   :  { %s687_s1 = scalar_lea.vmem %s62_s17, 1024  ;;  %p692_p0 = scmp.lt.s32.totalorder %s62_s17, %s62_s17 }
  0x3d   :  { %p688_p13 = scmp.ne.s32.totalorder %s62_s17, %s687_s1  ;;  %p693_p1 = scmp.lt.s32.totalorder %s687_s1, %s687_s1 }
  0x3f   :  { %p694_p2 = por %p693_p1, %p692_p0 }
  0x41   :  { %p695_p3 = pnand %p694_p2, %p688_p13 }
  0x43   :  { %698 = shalt.err (!%p695_p3)
}
  0x44   :  { %67 = dma.hbm_to_vmem [thread:$0]  %s871_s5, 1024, %s62_s17, [#allocation9], %s734_s0, %s734_s0, %s735_s27  }
  0x45   :  { %721 = dma.done.wait [#allocation3], 256  }
  0x46   :  { %722 = vsyncadd [#allocation3], 4294967040 }
  0x47   :  { %723 = dma.done.wait [#allocation6], 2304  }
  0x48   :  { %724 = vsyncadd [#allocation6], 4294964992 }
  0x49   :  { %725 = dma.done.wait [#allocation9], 1024  }
  0x4a   :  { %726 = vsyncadd [#allocation9], 4294966272  ;;  %v737_v0 = vmov 0   ;;  %v584_v1 = vld [vmem:[#allocation5 + $0x4] ss:$8 sps:$4 sm:$0xff]   ;;  %v83_v3 = vld [vmem:[#allocation2] sm:$0xff]  ;;  %v90_v28 = vlaneseq }
  0x4b   :  { %146 = vmatprep.mubr.bf16.mxu0 %v737_v0  ;;  %v586_v2 = vld [vmem:[#allocation5] ss:$8 sps:$4 sm:$0xff]   ;;  %v84_v4 = vld [vmem:[#allocation2 + $0x8] sm:$0xff]  ;;  %114 = vmatprep.subr.bf16.mxu0 %v584_v1  ;;  %v587_v6 = vld [vmem:[#allocation7 + $0x40] sm:$0xff]   ;;  %vm110_vm0 = vcmask 130048   ;;  %v738_v23 = vmov 0.0  }
  0x4c   :  { %v85_v5 = vpack.c.bf16 %v84_v4, %v83_v3  ;;  %115 = vmatpush1.bf16.msra.mxu0 %v586_v2  ;;  %v588_v7 = vld [vmem:[#allocation7] sm:$0xff]   ;;  %521 = vmatprep.subr.bf16.mxu1 %v587_v6  ;;  %v589_v8 = vld [vmem:[#allocation7 + $0x48] sm:$0xff]   ;;  %v591_v10 = vld [vmem:[#allocation7 + $0x50] sm:$0xff]   ;;  %v91_v29 = vshrl.u32 %v90_v28, 7  ;;  %vm739_vm1 = vmmov 0   ;;  %s740_s8 = smov [#allocation10]  }
  0x4d   :  { %522 = vmatpush3.bf16.msra.mxu1 %v588_v7  ;;  %v590_v9 = vld [vmem:[#allocation7 + $0x8] sm:$0xff]   ;;  %v592_v11 = vld [vmem:[#allocation7 + $0x10] sm:$0xff]   ;;  %v593_v12 = vld [vmem:[#allocation7 + $0x58] sm:$0xff]   ;;  %552 = vmatprep.subr.bf16.mxu0 %v738_v23 }
  0x4e   :  { %523 = vmatprep.subr.bf16.mxu1 %v589_v8  ;;  %v594_v13 = vld [vmem:[#allocation7 + $0x18] sm:$0xff]   ;;  %v595_v14 = vld [vmem:[#allocation7 + $0x60] sm:$0xff]   ;;  %v597_v16 = vld [vmem:[#allocation7 + $0x68] sm:$0xff]   ;;  %v92_v30 = vsub.s32 0, %v91_v29  ;;  %v96_v32 = vsub.s32 1, %v91_v29 }
  0x4f   :  { %485 = vmatmul.mubr.msk.bf16.vlgmr.msra.gmra.mrb[0].mxu0 %vm110_vm0, %v85_v5  ;;  %v596_v15 = vld [vmem:[#allocation7 + $0x20] sm:$0xff]   ;;  %v598_v17 = vld [vmem:[#allocation7 + $0x28] sm:$0xff]   ;;  %v599_v18 = vld [vmem:[#allocation7 + $0x70] sm:$0xff]  }
  0x50   :  { %v600_v19 = vld [vmem:[#allocation7 + $0x30] sm:$0xff]   ;;  %v601_v20 = vld [vmem:[#allocation7 + $0x78] sm:$0xff]   ;;  %v603_v22 = vld [vmem:[#allocation8] sm:$0xff]   ;;  %568 = vmatprep.mubr.msk.bf16.mxu0 %vm739_vm1, %v738_v23 }
  0x51   :  { %524 = vmatpush3.bf16.msra.mxu1 %v590_v9  ;;  %v602_v21 = vld [vmem:[#allocation7 + $0x38] sm:$0xff]   ;;  %553 = vmatpush3.bf16.msra.mxu0 %v603_v22  ;;  %v604_v24 = vld [vmem:[#allocation8 + $0x8] sm:$0xff]   ;;  %v605_v25 = vld [vmem:[#allocation8 + $0x10] sm:$0xff]  }
  0x52   :  { %525 = vmatprep.subr.bf16.mxu1 %v591_v10  ;;  %554 = vmatprep.subr.bf16.mxu0 %v738_v23  ;;  %v606_v26 = vld [vmem:[#allocation8 + $0x18] sm:$0xff]   ;;  %v607_v27 = vld [vmem:[#allocation8 + $0x20] sm:$0xff]   ;;  %v608_v49 = vld [vmem:[#allocation8 + $0x28] sm:$0xff]  }
  0x53   :  { %v88_v31 = vld [vmem:[%s868_s2] sm:$0x3]  ;;  %v609_v50 = vld [vmem:[#allocation8 + $0x30] sm:$0xff]   ;;  %v610_v51 = vld [vmem:[#allocation8 + $0x38] sm:$0xff]  }
  0x54   :  { %v93_v33 = vrot.slane %v88_v31, %v92_v30  ;;  %v97_v34 = vrot.slane %v88_v31, %v96_v32  ;;  %v486_v53 = vld [vmem:[%s870_s4] ss:$0 sm:$0xff]  ;;  %s469_s4 = sshll.u32 %s740_s8, 4  ;;  %s470_s4 = int_to_ptr.vmem [resolvable:$true] %s469_s4 }
  0x55   :  { %526 = vmatpush3.bf16.msra.mxu1 %v592_v11  ;;  %555 = vmatpush3.bf16.msra.mxu0 %v604_v24  ;;  %v503_v0 = vld [vmem:[%s872_s6] ss:$0 sm:$0xff]  ;;  %s699_s9 = scalar_lea.vmem %s470_s4, 128  ;;  %p704_p5 = scmp.lt.s32.totalorder %s470_s4, %s470_s4 }
  0x56   :  { %527 = vmatprep.subr.bf16.mxu1 %v593_v12  ;;  %556 = vmatprep.subr.bf16.mxu0 %v738_v23  ;;  %p700_p4 = scmp.ne.s32.totalorder %s470_s4, %s699_s9  ;;  %p705_p6 = scmp.lt.s32.totalorder %s699_s9, %s699_s9 }
  0x58   :  { %p706_p7 = por %p705_p6, %p704_p5 }
  0x59   :  { %528 = vmatpush3.bf16.msra.mxu1 %v594_v13  ;;  %557 = vmatpush3.bf16.msra.mxu0 %v605_v25 }
  0x5a   :  { %529 = vmatprep.subr.bf16.mxu1 %v595_v14  ;;  %558 = vmatprep.subr.bf16.mxu0 %v738_v23  ;;  %p707_p8 = pnand %p706_p7, %p700_p4 }
  0x5d   :  { %530 = vmatpush3.bf16.msra.mxu1 %v596_v15  ;;  %559 = vmatpush3.bf16.msra.mxu0 %v606_v26 }
  0x5e   :  { %531 = vmatprep.subr.bf16.mxu1 %v597_v16  ;;  %560 = vmatprep.subr.bf16.mxu0 %v738_v23 }
  0x61   :  { %532 = vmatpush3.bf16.msra.mxu1 %v598_v17  ;;  %561 = vmatpush3.bf16.msra.mxu0 %v607_v27 }
  0x62   :  { %533 = vmatprep.subr.bf16.mxu1 %v599_v18  ;;  %562 = vmatprep.subr.bf16.mxu0 %v738_v23 }
  0x65   :  { %534 = vmatpush3.bf16.msra.mxu1 %v600_v19  ;;  %563 = vmatpush3.bf16.msra.mxu0 %v608_v49 }
  0x66   :  { %535 = vmatprep.subr.bf16.mxu1 %v601_v20  ;;  %564 = vmatprep.subr.bf16.mxu0 %v738_v23 }
  0x69   :  { %536 = vmatpush3.bf16.msra.mxu1 %v602_v21  ;;  %565 = vmatpush3.bf16.msra.mxu0 %v609_v50 }
  0x6a   :  { %566 = vmatprep.subr.bf16.mxu0 %v738_v23 }
  0x6d   :  { %567 = vmatpush3.bf16.msra.mxu0 %v610_v51 }
 0x122   :  { %v148_v35 = vpop.f32.mrb[0].mxu0 }
 0x123   :  { %v149_v36 = vadd.f32 %v148_v35, %v93_v33  ;;  %v150_v37 = vpop.f32.mrb[1].mxu0 }
 0x124   :  { %v151_v38 = vadd.f32 %v150_v37, %v97_v34  ;;  %v152_v39 = vpop.f32.mrb[2].mxu0 }
 0x125   :  { %v153_v40 = vadd.f32 %v152_v39, %v93_v33  ;;  %v154_v41 = vpop.f32.mrb[3].mxu0  ;;  %v157_v43 = vmax.f32 %v149_v36, 0.0 }
 0x126   :  { %v155_v42 = vadd.f32 %v154_v41, %v97_v34  ;;  %v158_v45 = vmax.f32 %v151_v38, 0.0 }
 0x127   :  { %v159_v44 = vmax.f32 %v153_v40, 0.0 }
 0x128   :  { %v160_v46 = vmax.f32 %v155_v42, 0.0 }
 0x129   :  { %v161_v47 = vpack.c.bf16 %v159_v44, %v157_v43 }
 0x12a   :  { %v162_v48 = vpack.c.bf16 %v160_v46, %v158_v45 }
 0x12c   :  { %330 = vmatprep.mubr.bf16.mxu1 %v162_v48 }
 0x12d   :  { %331 = vmatmul.mubr.bf16.vlgmr.msra.gmra.mrb[0].mxu1 %v161_v47 }
 0x200   :  { %v537_v52 = vpop.f32.mrb[0].mxu1 }
 0x201   :  { %v538_v54 = vpop.f32.mrb[1].mxu1 }
 0x202   :  { %v539_v55 = vadd.f32 %v538_v54, %v537_v52  ;;  %v540_v56 = vpop.f32.mrb[2].mxu1 }
 0x203   :  { %v541_v57 = vpop.f32.mrb[3].mxu1 }
 0x204   :  { %v333_v58 = vadd.f32 %v539_v55, %v486_v53  ;;  %v542_v59 = vadd.f32 %v541_v57, %v540_v56 }
 0x206   :  { %v336_v60 = vadd.f32 %v542_v59, %v486_v53  ;;  %v339_v61 = vmax.f32 %v333_v58, 0.0 }
 0x208   :  { %v340_v62 = vmax.f32 %v336_v60, 0.0 }
 0x20a   :  { %v341_v63 = vpack.c.bf16 %v340_v62, %v339_v61 }
 0x20c   :  { %569 = vmatmul.mubr.bf16.vlgmr.msra.gmra.mrb[4].mxu0 %v341_v63 }
 0x2df   :  { %v447_v1 = vpop.f32.mrb[4].mxu0 }
 0x2e0   :  { %v570_v2 = vpop.f32.mrb[5].mxu0  ;;  %v448_v4 = vadd.f32 %v503_v0, %v447_v1 }
 0x2e1   :  { %v450_v3 = vpop.f32.mrb[6].mxu0 }
 0x2e2   :  { %v451_v5 = vadd.f32 %v503_v0, %v450_v3  ;;  %v571_v6 = vpop.f32.mrb[7].mxu0 }
 0x2e4   :  { %v519_v7 = vpack.c.bf16 %v451_v5, %v448_v4 }
 0x2e6   :  { %520 = vst [vmem:[#allocation10] sm:$0xff] %v519_v7  }
 0x2e7   :  { %710 = shalt.err (!%p707_p8)
}
 0x2e8   :  { %s711_s11 = scalar_lea.hbm %s873_s7, 128 }
 0x2e9   :  { %p712_p9 = scmp.ne.s32.totalorder %s873_s7, %s711_s11  ;;  %p715_p10 = scmp.lt.u32.totalorder %s711_s11, %s873_s7 }
 0x2eb   :  { %p717_p11 = pnand %p715_p10, %p712_p9 }
 0x2ed   :  { %720 = shalt.err (!%p717_p11)
}
 0x2ee   :  { %475 = dma.vmem_to_hbm [thread:$0]  %s470_s4, 128, %s873_s7, [#allocation4], %s734_s0, %s734_s0, %s735_s27  }
 0x2ef   :  { %727 = dma.done.wait [#allocation4], 128  }
 0x2f0   :  { %728 = vsyncadd [#allocation4], 4294967168 }
 0x2f1   :  { %479 = vsyncpa [#allocation3], 1 }
 0x2f2   :  { %480 = vsyncpa [#allocation6], 1 }
 0x2f3   :  { %481 = vsyncpa [#allocation9], 1 }
 0x2f4   :  { %482 = vsyncpa [#allocation4], 1 }

// kernel: tpu_custom_call.1
= control target key start
LH: loop header
LB: loop body
LE: loop exit
PB: predicated region body
PF: predicated region fallthrough
CT: control target
= control target key end

     0   :  { %12 = vsyncpa [#allocation3], 0  ;;  %s866_s0 = inlined_call_operand.hbm [shape: f32[16,16], index: 0, kind: input, shape index: {}]   ;;  %s867_s1 = inlined_call_operand.hbm [shape: bf16[16,256], index: 1, kind: input, shape index: {}]   ;;  %s868_s2 = inlined_call_operand.vmem [shape: f32[1,256], index: 2, kind: input, shape index: {}]   ;;  %s869_s3 = inlined_call_operand.hbm [shape: bf16[256,128], index: 3, kind: input, shape index: {}]   ;;  %s870_s4 = inlined_call_operand.vmem [shape: f32[1,128], index: 4, kind: input, shape index: {}]   ;;  %s871_s5 = inlined_call_operand.hbm [shape: bf16[128,128], index: 5, kind: input, shape index: {}]   ;;  %s872_s6 = inlined_call_operand.vmem [shape: f32[1,128], index: 6, kind: input, shape index: {}]   ;;  %s873_s7 = inlined_call_operand.hbm [shape: bf16[16,128], index: 7, kind: output, shape index: {}]  }
   0x1   :  { %13 = vsyncpa [#allocation6], 0 }
   0x2   :  { %14 = vsyncpa [#allocation9], 0 }
   0x3   :  { %15 = vsyncpa [#allocation4], 0  ;;  %s729_s24 = smov [#allocation5]   ;;  %s730_s26 = smov [#allocation2]  }
   0x4   :  { %s33_s25 = sshll.u32 %s729_s24, 4  ;;  %s21_s27 = sshll.u32 %s730_s26, 4  ;;  %s34_s25 = int_to_ptr.vmem [resolvable:$true] %s33_s25  ;;  %s781_s27 = int_to_ptr.vmem [resolvable:$true] %s21_s27 }
   0x5   :  { %s611_s30 = scalar_lea.hbm %s867_s1, 256 }
   0x6   :  { %p612_p0 = scmp.ne.s32.totalorder %s867_s1, %s611_s30  ;;  %p615_p1 = scmp.lt.u32.totalorder %s611_s30, %s867_s1 }
   0x8   :  { %p617_p2 = pnand %p615_p1, %p612_p0 }
   0xa   :  { %620 = shalt.err (!%p617_p2)
}
   0xb   :  { %s621_s12 = scalar_lea.vmem %s34_s25, 256  ;;  %p626_p4 = scmp.lt.s32.totalorder %s34_s25, %s34_s25 }
   0xc   :  { %p622_p3 = scmp.ne.s32.totalorder %s34_s25, %s621_s12  ;;  %p627_p5 = scmp.lt.s32.totalorder %s621_s12, %s621_s12 }
   0xe   :  { %p628_p6 = por %p627_p5, %p626_p4 }
  0x10   :  { %p629_p7 = pnand %p628_p6, %p622_p3 }
  0x12   :  { %632 = shalt.err (!%p629_p7)
}
  0x13   :  { %s731_s13 = smov 128   ;;  %s732_s14 = smov 8  }
  0x14   :  { %39 = dma.hbm_to_vmem [thread:$0]  %s867_s1, 256, %s34_s25, [#allocation6], %s731_s13, %s731_s13, %s732_s14  }
  0x15   :  { %s633_s19 = scalar_lea.hbm %s866_s0, 256 }
  0x16   :  { %p634_p8 = scmp.ne.s32.totalorder %s866_s0, %s633_s19  ;;  %p637_p9 = scmp.lt.u32.totalorder %s633_s19, %s866_s0 }
  0x18   :  { %p639_p10 = pnand %p637_p9, %p634_p8 }
  0x1a   :  { %642 = shalt.err (!%p639_p10)
}
  0x1b   :  { %s643_s24 = scalar_lea.vmem %s781_s27, 256  ;;  %p648_p12 = scmp.lt.s32.totalorder %s781_s27, %s781_s27 }
  0x1c   :  { %p644_p11 = scmp.ne.s32.totalorder %s781_s27, %s643_s24  ;;  %p649_p13 = scmp.lt.s32.totalorder %s643_s24, %s643_s24 }
  0x1e   :  { %p650_p0 = por %p649_p13, %p648_p12 }
  0x20   :  { %p651_p1 = pnand %p650_p0, %p644_p11 }
  0x22   :  { %654 = shalt.err (!%p651_p1)
}
  0x23   :  { %27 = dma.hbm_to_vmem [thread:$0]  %s866_s0, 256, %s781_s27, [#allocation3], %s731_s13, %s731_s13, %s732_s14  }
  0x24   :  { %s733_s26 = smov [#allocation7]   ;;  %s655_s8 = scalar_lea.hbm %s869_s3, 2048 }
  0x25   :  { %s47_s28 = sshll.u32 %s733_s26, 4  ;;  %p656_p2 = scmp.ne.s32.totalorder %s869_s3, %s655_s8  ;;  %s48_s28 = int_to_ptr.vmem [resolvable:$true] %s47_s28 }
  0x26   :  { %p659_p3 = scmp.lt.u32.totalorder %s655_s8, %s869_s3 }
  0x28   :  { %p661_p4 = pnand %p659_p3, %p656_p2 }
  0x2a   :  { %664 = shalt.err (!%p661_p4)
}
  0x2b   :  { %s665_s15 = scalar_lea.vmem %s48_s28, 2048  ;;  %p670_p6 = scmp.lt.s32.totalorder %s48_s28, %s48_s28 }
  0x2c   :  { %p666_p5 = scmp.ne.s32.totalorder %s48_s28, %s665_s15  ;;  %p671_p7 = scmp.lt.s32.totalorder %s665_s15, %s665_s15 }
  0x2e   :  { %p672_p8 = por %p671_p7, %p670_p6 }
  0x30   :  { %p673_p9 = pnand %p672_p8, %p666_p5 }
  0x32   :  { %676 = shalt.err (!%p673_p9)
}
  0x33   :  { %s734_s0 = smov 64   ;;  %s735_s27 = smov 4  }
  0x34   :  { %53 = dma.hbm_to_vmem [thread:$0]  %s869_s3, 2048, %s48_s28, [#allocation6], %s734_s0, %s734_s0, %s735_s27  }
  0x35   :  { %s736_s16 = smov [#allocation8]   ;;  %s677_s20 = scalar_lea.hbm %s871_s5, 1024 }
  0x36   :  { %s61_s17 = sshll.u32 %s736_s16, 4  ;;  %p678_p10 = scmp.ne.s32.totalorder %s871_s5, %s677_s20  ;;  %s62_s17 = int_to_ptr.vmem [resolvable:$true] %s61_s17 }
  0x37   :  { %p681_p11 = scmp.lt.u32.totalorder %s677_s20, %s871_s5 }
  0x39   :  { %p683_p12 = pnand %p681_p11, %p678_p10 }
  0x3b   :  { %686 = shalt.err (!%p683_p12)
}
  0x3c   :  { %s687_s1 = scalar_lea.vmem %s62_s17, 1024  ;;  %p692_p0 = scmp.lt.s32.totalorder %s62_s17, %s62_s17 }
  0x3d   :  { %p688_p13 = scmp.ne.s32.totalorder %s62_s17, %s687_s1  ;;  %p693_p1 = scmp.lt.s32.totalorder %s687_s1, %s687_s1 }
  0x3f   :  { %p694_p2 = por %p693_p1, %p692_p0 }
  0x41   :  { %p695_p3 = pnand %p694_p2, %p688_p13 }
  0x43   :  { %698 = shalt.err (!%p695_p3)
}
  0x44   :  { %67 = dma.hbm_to_vmem [thread:$0]  %s871_s5, 1024, %s62_s17, [#allocation9], %s734_s0, %s734_s0, %s735_s27  }
  0x45   :  { %721 = dma.done.wait [#allocation3], 256  }
  0x46   :  { %722 = vsyncadd [#allocation3], 4294967040 }
  0x47   :  { %723 = dma.done.wait [#allocation6], 2304  }
  0x48   :  { %724 = vsyncadd [#allocation6], 4294964992 }
  0x49   :  { %725 = dma.done.wait [#allocation9], 1024  }
  0x4a   :  { %726 = vsyncadd [#allocation9], 4294966272  ;;  %v737_v0 = vmov 0   ;;  %v584_v1 = vld [vmem:[#allocation5 + $0x4] ss:$8 sps:$4 sm:$0xff]   ;;  %v83_v3 = vld [vmem:[#allocation2] sm:$0xff]  ;;  %v90_v28 = vlaneseq }
  0x4b   :  { %146 = vmatprep.mubr.bf16.mxu0 %v737_v0  ;;  %v586_v2 = vld [vmem:[#allocation5] ss:$8 sps:$4 sm:$0xff]   ;;  %v84_v4 = vld [vmem:[#allocation2 + $0x8] sm:$0xff]  ;;  %114 = vmatprep.subr.bf16.mxu0 %v584_v1  ;;  %v587_v6 = vld [vmem:[#allocation7 + $0x40] sm:$0xff]   ;;  %vm110_vm0 = vcmask 130048   ;;  %v738_v23 = vmov 0.0  }
  0x4c   :  { %v85_v5 = vpack.c.bf16 %v84_v4, %v83_v3  ;;  %115 = vmatpush1.bf16.msra.mxu0 %v586_v2  ;;  %v588_v7 = vld [vmem:[#allocation7] sm:$0xff]   ;;  %521 = vmatprep.subr.bf16.mxu1 %v587_v6  ;;  %v589_v8 = vld [vmem:[#allocation7 + $0x48] sm:$0xff]   ;;  %v591_v10 = vld [vmem:[#allocation7 + $0x50] sm:$0xff]   ;;  %v91_v29 = vshrl.u32 %v90_v28, 7  ;;  %vm739_vm1 = vmmov 0   ;;  %s740_s8 = smov [#allocation10]  }
  0x4d   :  { %522 = vmatpush3.bf16.msra.mxu1 %v588_v7  ;;  %v590_v9 = vld [vmem:[#allocation7 + $0x8] sm:$0xff]   ;;  %v592_v11 = vld [vmem:[#allocation7 + $0x10] sm:$0xff]   ;;  %v593_v12 = vld [vmem:[#allocation7 + $0x58] sm:$0xff]   ;;  %552 = vmatprep.subr.bf16.mxu0 %v738_v23 }
  0x4e   :  { %523 = vmatprep.subr.bf16.mxu1 %v589_v8  ;;  %v594_v13 = vld [vmem:[#allocation7 + $0x18] sm:$0xff]   ;;  %v595_v14 = vld [vmem:[#allocation7 + $0x60] sm:$0xff]   ;;  %v597_v16 = vld [vmem:[#allocation7 + $0x68] sm:$0xff]   ;;  %v92_v30 = vsub.s32 0, %v91_v29  ;;  %v96_v32 = vsub.s32 1, %v91_v29 }
  0x4f   :  { %485 = vmatmul.mubr.msk.bf16.vlgmr.msra.gmra.mrb[0].mxu0 %vm110_vm0, %v85_v5  ;;  %v596_v15 = vld [vmem:[#allocation7 + $0x20] sm:$0xff]   ;;  %v598_v17 = vld [vmem:[#allocation7 + $0x28] sm:$0xff]   ;;  %v599_v18 = vld [vmem:[#allocation7 + $0x70] sm:$0xff]  }
  0x50   :  { %v600_v19 = vld [vmem:[#allocation7 + $0x30] sm:$0xff]   ;;  %v601_v20 = vld [vmem:[#allocation7 + $0x78] sm:$0xff]   ;;  %v603_v22 = vld [vmem:[#allocation8] sm:$0xff]   ;;  %568 = vmatprep.mubr.msk.bf16.mxu0 %vm739_vm1, %v738_v23 }
  0x51   :  { %524 = vmatpush3.bf16.msra.mxu1 %v590_v9  ;;  %v602_v21 = vld [vmem:[#allocation7 + $0x38] sm:$0xff]   ;;  %553 = vmatpush3.bf16.msra.mxu0 %v603_v22  ;;  %v604_v24 = vld [vmem:[#allocation8 + $0x8] sm:$0xff]   ;;  %v605_v25 = vld [vmem:[#allocation8 + $0x10] sm:$0xff]  }
  0x52   :  { %525 = vmatprep.subr.bf16.mxu1 %v591_v10  ;;  %554 = vmatprep.subr.bf16.mxu0 %v738_v23  ;;  %v606_v26 = vld [vmem:[#allocation8 + $0x18] sm:$0xff]   ;;  %v607_v27 = vld [vmem:[#allocation8 + $0x20] sm:$0xff]   ;;  %v608_v49 = vld [vmem:[#allocation8 + $0x28] sm:$0xff]  }
  0x53   :  { %v88_v31 = vld [vmem:[%s868_s2] sm:$0x3]  ;;  %v609_v50 = vld [vmem:[#allocation8 + $0x30] sm:$0xff]   ;;  %v610_v51 = vld [vmem:[#allocation8 + $0x38] sm:$0xff]  }
  0x54   :  { %v93_v33 = vrot.slane %v88_v31, %v92_v30  ;;  %v97_v34 = vrot.slane %v88_v31, %v96_v32  ;;  %v486_v53 = vld [vmem:[%s870_s4] ss:$0 sm:$0xff]  ;;  %s469_s4 = sshll.u32 %s740_s8, 4  ;;  %s470_s4 = int_to_ptr.vmem [resolvable:$true] %s469_s4 }
  0x55   :  { %526 = vmatpush3.bf16.msra.mxu1 %v592_v11  ;;  %555 = vmatpush3.bf16.msra.mxu0 %v604_v24  ;;  %v503_v0 = vld [vmem:[%s872_s6] ss:$0 sm:$0xff]  ;;  %s699_s9 = scalar_lea.vmem %s470_s4, 128  ;;  %p704_p5 = scmp.lt.s32.totalorder %s470_s4, %s470_s4 }
  0x56   :  { %527 = vmatprep.subr.bf16.mxu1 %v593_v12  ;;  %556 = vmatprep.subr.bf16.mxu0 %v738_v23  ;;  %p700_p4 = scmp.ne.s32.totalorder %s470_s4, %s699_s9  ;;  %p705_p6 = scmp.lt.s32.totalorder %s699_s9, %s699_s9 }
  0x58   :  { %p706_p7 = por %p705_p6, %p704_p5 }
  0x59   :  { %528 = vmatpush3.bf16.msra.mxu1 %v594_v13  ;;  %557 = vmatpush3.bf16.msra.mxu0 %v605_v25 }
  0x5a   :  { %529 = vmatprep.subr.bf16.mxu1 %v595_v14  ;;  %558 = vmatprep.subr.bf16.mxu0 %v738_v23  ;;  %p707_p8 = pnand %p706_p7, %p700_p4 }
  0x5d   :  { %530 = vmatpush3.bf16.msra.mxu1 %v596_v15  ;;  %559 = vmatpush3.bf16.msra.mxu0 %v606_v26 }
  0x5e   :  { %531 = vmatprep.subr.bf16.mxu1 %v597_v16  ;;  %560 = vmatprep.subr.bf16.mxu0 %v738_v23 }
  0x61   :  { %532 = vmatpush3.bf16.msra.mxu1 %v598_v17  ;;  %561 = vmatpush3.bf16.msra.mxu0 %v607_v27 }
  0x62   :  { %533 = vmatprep.subr.bf16.mxu1 %v599_v18  ;;  %562 = vmatprep.subr.bf16.mxu0 %v738_v23 }
  0x65   :  { %534 = vmatpush3.bf16.msra.mxu1 %v600_v19  ;;  %563 = vmatpush3.bf16.msra.mxu0 %v608_v49 }
  0x66   :  { %535 = vmatprep.subr.bf16.mxu1 %v601_v20  ;;  %564 = vmatprep.subr.bf16.mxu0 %v738_v23 }
  0x69   :  { %536 = vmatpush3.bf16.msra.mxu1 %v602_v21  ;;  %565 = vmatpush3.bf16.msra.mxu0 %v609_v50 }
  0x6a   :  { %566 = vmatprep.subr.bf16.mxu0 %v738_v23 }
  0x6d   :  { %567 = vmatpush3.bf16.msra.mxu0 %v610_v51 }
 0x122   :  { %v148_v35 = vpop.f32.mrb[0].mxu0 }
 0x123   :  { %v149_v36 = vadd.f32 %v148_v35, %v93_v33  ;;  %v150_v37 = vpop.f32.mrb[1].mxu0 }
 0x124   :  { %v151_v38 = vadd.f32 %v150_v37, %v97_v34  ;;  %v152_v39 = vpop.f32.mrb[2].mxu0 }
 0x125   :  { %v153_v40 = vadd.f32 %v152_v39, %v93_v33  ;;  %v154_v41 = vpop.f32.mrb[3].mxu0  ;;  %v157_v43 = vmax.f32 %v149_v36, 0.0 }
 0x126   :  { %v155_v42 = vadd.f32 %v154_v41, %v97_v34  ;;  %v158_v45 = vmax.f32 %v151_v38, 0.0 }
 0x127   :  { %v159_v44 = vmax.f32 %v153_v40, 0.0 }
 0x128   :  { %v160_v46 = vmax.f32 %v155_v42, 0.0 }
 0x129   :  { %v161_v47 = vpack.c.bf16 %v159_v44, %v157_v43 }
 0x12a   :  { %v162_v48 = vpack.c.bf16 %v160_v46, %v158_v45 }
 0x12c   :  { %330 = vmatprep.mubr.bf16.mxu1 %v162_v48 }
 0x12d   :  { %331 = vmatmul.mubr.bf16.vlgmr.msra.gmra.mrb[0].mxu1 %v161_v47 }
 0x200   :  { %v537_v52 = vpop.f32.mrb[0].mxu1 }
 0x201   :  { %v538_v54 = vpop.f32.mrb[1].mxu1 }
 0x202   :  { %v539_v55 = vadd.f32 %v538_v54, %v537_v52  ;;  %v540_v56 = vpop.f32.mrb[2].mxu1 }
 0x203   :  { %v541_v57 = vpop.f32.mrb[3].mxu1 }
 0x204   :  { %v333_v58 = vadd.f32 %v539_v55, %v486_v53  ;;  %v542_v59 = vadd.f32 %v541_v57, %v540_v56 }
 0x206   :  { %v336_v60 = vadd.f32 %v542_v59, %v486_v53  ;;  %v339_v61 = vmax.f32 %v333_v58, 0.0 }
 0x208   :  { %v340_v62 = vmax.f32 %v336_v60, 0.0 }
 0x20a   :  { %v341_v63 = vpack.c.bf16 %v340_v62, %v339_v61 }
 0x20c   :  { %569 = vmatmul.mubr.bf16.vlgmr.msra.gmra.mrb[4].mxu0 %v341_v63 }
 0x2df   :  { %v447_v1 = vpop.f32.mrb[4].mxu0 }
 0x2e0   :  { %v570_v2 = vpop.f32.mrb[5].mxu0  ;;  %v448_v4 = vadd.f32 %v503_v0, %v447_v1 }
 0x2e1   :  { %v450_v3 = vpop.f32.mrb[6].mxu0 }
 0x2e2   :  { %v451_v5 = vadd.f32 %v503_v0, %v450_v3  ;;  %v571_v6 = vpop.f32.mrb[7].mxu0 }
 0x2e4   :  { %v519_v7 = vpack.c.bf16 %v451_v5, %v448_v4 }
 0x2e6   :  { %520 = vst [vmem:[#allocation10] sm:$0xff] %v519_v7  }
 0x2e7   :  { %710 = shalt.err (!%p707_p8)
}
 0x2e8   :  { %s711_s11 = scalar_lea.hbm %s873_s7, 128 }
 0x2e9   :  { %p712_p9 = scmp.ne.s32.totalorder %s873_s7, %s711_s11  ;;  %p715_p10 = scmp.lt.u32.totalorder %s711_s11, %s873_s7 }
 0x2eb   :  { %p717_p11 = pnand %p715_p10, %p712_p9 }
 0x2ed   :  { %720 = shalt.err (!%p717_p11)
}
 0x2ee   :  { %475 = dma.vmem_to_hbm [thread:$0]  %s470_s4, 128, %s873_s7, [#allocation4], %s734_s0, %s734_s0, %s735_s27  }
 0x2ef   :  { %727 = dma.done.wait [#allocation4], 128  }
 0x2f0   :  { %728 = vsyncadd [#allocation4], 4294967168 }
 0x2f1   :  { %479 = vsyncpa [#allocation3], 1 }
 0x2f2   :  { %480 = vsyncpa [#allocation6], 1 }
 0x2f3   :  { %481 = vsyncpa [#allocation9], 1 }
 0x2f4   :  { %482 = vsyncpa [#allocation4], 1 }

</bundles_post_ra>
